<compile_context>
chip_gen: v6e
topology: v6e:2x2x1
jax: 0.10.0
libtpu: 0.0.40
codegen_flags: <defaults>
</compile_context>

<pallas_src>
import jax
import jax.numpy as jnp
import numpy as np
from jax import lax
from jax.experimental import pallas as pl
from jax.experimental.pallas import tpu as pltpu

K_SIZE = 5
PAD = (K_SIZE - 1) // 2

_DEFAULT_VMEM_BYTES = 64 * 1024 * 1024  # v7x per-TensorCore VMEM (smallest gen)


# --------------------------------------------------------------------------- #
# Shared in-kernel helpers
# --------------------------------------------------------------------------- #
def _conv_sigmoid(avg, w_ref):
    """Conv1d(1,1,k=5,pad=2,bias=False) along the last axis of `avg` + sigmoid.

    avg:   (Bb, E) float32 register value, E on the lane axis.
    w_ref: (K,)    float32 in SMEM.

    Five unrolled FMAs over pltpu.roll (XLU lane rotations) with iota edge
    masks — entirely in registers, no padded scratch / unaligned slices.
    """
    _, E = avg.shape
    e_idx = lax.broadcasted_iota(jnp.int32, (1, E), 1)
    y = w_ref[PAD] * avg
    for d in range(1, PAD + 1):
        # avg[e + d] (circular) — zeroed where e + d >= E.
        plus = pltpu.roll(avg, shift=(E - d) % E, axis=1)
        y = y + w_ref[PAD + d] * jnp.where(e_idx < E - d, plus, 0.0)
        # avg[e - d] (circular) — zeroed where e - d < 0.
        minus = pltpu.roll(avg, shift=d % E, axis=1)
        y = y + w_ref[PAD - d] * jnp.where(e_idx >= d, minus, 0.0)
    return jax.nn.sigmoid(y)


def _split_dot(a, seg, dimension_numbers):
    """dot_general(a, seg) that stays f32-accurate even if the MXU rounds its
    operands to bf16: `seg` is a 0/1 matrix (exact in bf16), `a` is split into
    a bf16-representable high part plus an f32 residual."""
    a_hi = a.astype(jnp.bfloat16).astype(jnp.float32)
    a_lo = a - a_hi
    out = lax.dot_general(a_hi, seg, dimension_numbers,
                          preferred_element_type=jnp.float32)
    return out + lax.dot_general(a_lo, seg, dimension_numbers,
                                 preferred_element_type=jnp.float32)


# --------------------------------------------------------------------------- #
# Kernel 1: lane-dense flat path (primary for ragged / small T)
# --------------------------------------------------------------------------- #
def eca_flat_kernel(len_ref, tpos_ref, seg_ref, w_ref, x_ref, o_ref):
    """x viewed as (B, E*T) so loads, VPU ops and stores are lane-dense.

    len_ref  : VMEM (B, 1)   int32  resident (fetched once)
    tpos_ref : VMEM (1, ET)  int32  resident — time index of each flat position
    seg_ref  : VMEM (E, ET)  f32    resident — seg[e, p] = 1 iff p // T == e
    w_ref    : SMEM (K,)     f32    conv weights
    x_ref    : VMEM (Bb, ET) f32    current batch block
    o_ref    : VMEM (Bb, ET) f32
    """
    i = pl.program_id(0)
    bb, _ = x_ref.shape

    lens = len_ref[pl.ds(i * bb, bb), :]                       # (Bb, 1) int32
    maskf = (tpos_ref[...] < lens).astype(jnp.float32)         # (Bb, ET)

    # Masked per-channel sum on the MXU: (Bb, ET) x (E, ET)^T -> (Bb, E).
    ssum = _split_dot(x_ref[...] * maskf, seg_ref[...],
                      (((1,), (1,)), ((), ())))
    lens_f = jnp.maximum(lens.astype(jnp.float32), 1.0)        # length==0 guard
    avg = ssum * pl.reciprocal(lens_f, approx=False)           # (Bb, E)

    gate = _conv_sigmoid(avg, w_ref)                           # (Bb, E)

    # Channel -> flat-position broadcast: (Bb, E) x (E, ET) -> (Bb, ET);
    # exact selection since every column of seg is one-hot.
    gate_flat = _split_dot(gate, seg_ref[...], (((1,), (0,)), ((), ())))

    o_ref[...] = x_ref[...] * gate_flat                        # lane-dense store


# --------------------------------------------------------------------------- #
# Kernel 2: standard (B, E, T) path (fallback; e.g. T already a 128-multiple)
# --------------------------------------------------------------------------- #
def eca_std_kernel(len_ref, w_ref, x_ref, o_ref, pad_ref):
    """Fallback layout (used when T % 128 == 0, or when the flat path's
    channel-segment matrix would be too large).

    len_ref : VMEM (B, 1, 1) int32 resident
    w_ref   : SMEM (K,) f32
    x_ref   : VMEM (Bb, E, T) f32
    o_ref   : VMEM (Bb, E, T) f32
    pad_ref : VMEM (Bb, E + 2*PAD, 1) f32 scratch (zero-padded channel means).
              Kept only on this fallback path (tiny, off the HBM path); the
              flat kernel above is the scratch-free, lane-dense primary path.
    """
    i = pl.program_id(0)
    bb, E, T = x_ref.shape

    lens = len_ref[pl.ds(i * bb, bb)]                          # (Bb, 1, 1)
    t_idx = lax.broadcasted_iota(jnp.int32, (1, 1, T), 2)
    maskf = (t_idx < lens).astype(jnp.float32)                 # (Bb, 1, T)

    ssum = jnp.sum(x_ref[...] * maskf, axis=2, keepdims=True)  # (Bb, E, 1)
    lens_f = jnp.maximum(lens.astype(jnp.float32), 1.0)        # length==0 guard
    avg = ssum * pl.reciprocal(lens_f, approx=False)           # (Bb, E, 1)

    # Conv1d(1,1,5,pad=2) along channels via static slices of a zero-padded
    # scratch (proven lowering for this layout).
    pad_ref[...] = jnp.zeros_like(pad_ref)
    pad_ref[:, PAD:PAD + E, :] = avg
    y = w_ref[0] * pad_ref[:, 0:E, :]
    for j in range(1, K_SIZE):
        y = y + w_ref[j] * pad_ref[:, j:j + E, :]

    o_ref[...] = x_ref[...] * jax.nn.sigmoid(y)


# --------------------------------------------------------------------------- #
# Wrapper-side sizing helpers
# --------------------------------------------------------------------------- #
def _vmem_capacity_bytes():
    try:
        return int(pltpu.get_tpu_info().vmem_capacity_bytes)
    except Exception:
        return _DEFAULT_VMEM_BYTES


def _round_up(x, m):
    return (x + m - 1) // m * m


def _choose_block_b(B, row_vmem_bytes, vmem_cap, *, flat):
    """Largest divisor of B whose block fits a per-generation cap (~VMEM/8:
    ~8 MiB on v7x, 16 MiB on v5e/v6e); only shrink to get >= 4 grid steps
    (pipeline depth / both v7x TensorCores) when blocks stay >= 1 MiB."""
    block_cap = max(row_vmem_bytes, min(16 << 20, vmem_cap // 8))

    def ok(d):
        if B % d:
            return False
        # Flat blocks put batch on the sublane axis: must be a multiple of 8
        # (or the full array) to satisfy the (8, 128) block constraint.
        return (not flat) or d % 8 == 0 or d == B

    divs = [d for d in range(1, B + 1) if ok(d)]
    fits = [d for d in divs if d * row_vmem_bytes <= block_cap] or divs[:1]
    best = max(fits)
    deep = [d for d in fits if B // d >= 4 and d * row_vmem_bytes >= (1 << 20)]
    if deep:
        best = max(deep)
    return best


def _vmem_limit(block_vmem_bytes, resident_bytes, vmem_cap):
    # 2x double-buffered input + 2x output + resident helpers + slack,
    # clamped to 3/4 of the per-core VMEM (48 MiB on v7x, 96 MiB on v5e/v6e).
    need = 4 * block_vmem_bytes + resident_bytes + (4 << 20)
    return int(min(max(32 << 20, need), max(32 << 20, vmem_cap * 3 // 4)))


# --------------------------------------------------------------------------- #
# pallas_call wrappers
# --------------------------------------------------------------------------- #
def _eca_forward_flat(x, length, weight, block_b, vmem_cap):
    B, E, T = x.shape
    ET = E * T
    itemsize = x.dtype.itemsize

    row_vmem = _round_up(ET, 128) * itemsize
    if block_b is None:
        block_b = _choose_block_b(B, row_vmem, vmem_cap, flat=True)
    assert B % block_b == 0
    grid_b = B // block_b

    # Small resident helper arrays (built once, fetched once).
    p = jnp.arange(ET, dtype=jnp.int32)
    tpos = (p % T).reshape(1, ET)                                   # time index
    seg = (p[None, :] // T == jnp.arange(E, dtype=jnp.int32)[:, None]
           ).astype(jnp.float32)                                    # (E, ET) 0/1
    lens2 = length.astype(jnp.int32).reshape(B, 1)
    x_flat = x.reshape(B, ET)                                       # free reshape

    resident = (E * _round_up(ET, 128) + _round_up(ET, 128)) * 4 \
        + _round_up(B, 8) * 128 * 4
    vmem_limit = _vmem_limit(block_b * row_vmem, resident, vmem_cap)

    cost = pl.CostEstimate(
        flops=int(5 * B * ET + 8 * B * E * ET),
        transcendentals=int(B * E),
        bytes_accessed=int((2 * B * ET + E * ET + ET + 2 * B) * itemsize),
    )

    out_flat = pl.pallas_call(
        eca_flat_kernel,
        out_shape=jax.ShapeDtypeStruct((B, ET), x.dtype),
        grid=(grid_b,),
        in_specs=[
            pl.BlockSpec((B, 1), lambda i: (0, 0)),               # lengths (resident)
            pl.BlockSpec((1, ET), lambda i: (0, 0)),              # time index (resident)
            pl.BlockSpec((E, ET), lambda i: (0, 0)),              # channel segments (resident)
            pl.BlockSpec(memory_space=pltpu.MemorySpace.SMEM),    # conv weights
            pl.BlockSpec((block_b, ET), lambda i: (i, 0)),        # x (lane-dense)
        ],
        out_specs=pl.BlockSpec((block_b, ET), lambda i: (i, 0)),
        compiler_params=pltpu.CompilerParams(
            dimension_semantics=("parallel",),
            vmem_limit_bytes=vmem_limit),
        cost_estimate=cost,
    )(lens2, tpos, seg, weight, x_flat)
    return out_flat.reshape(B, E, T)


def _eca_forward_std(x, length, weight, block_b, vmem_cap):
    B, E, T = x.shape
    itemsize = x.dtype.itemsize

    # Real VMEM footprint per batch row includes the (8, 128) tile padding.
    row_vmem = _round_up(E, 8) * _round_up(T, 128) * itemsize
    if block_b is None:
        block_b = _choose_block_b(B, row_vmem, vmem_cap, flat=False)
    assert B % block_b == 0
    grid_b = B // block_b

    lens3 = length.astype(jnp.int32).reshape(B, 1, 1)
    resident = _round_up(B, 8) * 128 * 4
    vmem_limit = _vmem_limit(block_b * row_vmem, resident, vmem_cap)

    cost = pl.CostEstimate(
        flops=int(5 * B * E * T),
        transcendentals=int(B * E),
        bytes_accessed=int((2 * B * E * T + B) * itemsize),
    )

    return pl.pallas_call(
        eca_std_kernel,
        out_shape=jax.ShapeDtypeStruct((B, E, T), x.dtype),
        grid=(grid_b,),
        in_specs=[
            pl.BlockSpec((B, 1, 1), lambda i: (0, 0, 0)),          # lengths (resident)
            pl.BlockSpec(memory_space=pltpu.MemorySpace.SMEM),     # conv weights
            pl.BlockSpec((block_b, E, T), lambda i: (i, 0, 0)),    # x
        ],
        out_specs=pl.BlockSpec((block_b, E, T), lambda i: (i, 0, 0)),
        scratch_shapes=[pltpu.VMEM((block_b, E + 2 * PAD, 1), jnp.float32)],
        compiler_params=pltpu.CompilerParams(
            dimension_semantics=("parallel",),
            vmem_limit_bytes=vmem_limit),
        cost_estimate=cost,
    )(lens3, weight, x)


def eca_forward(x, length, weight, *, block_b=None):
    """ECALayer forward: x (B, E, T) f32, length (B,) int, weight (k_size,) f32."""
    B, E, T = x.shape
    weight = weight.reshape(-1)
    assert weight.shape[0] == K_SIZE
    vmem_cap = _vmem_capacity_bytes()

    # Lane-dense flat path when T would leave lanes mostly idle and the
    # (E, E*T) channel-segment matrix stays small (MXU work ~2*E flops/elem).
    seg_bytes = E * E * T * 4
    use_flat = (T % 128 != 0 and seg_bytes <= (2 << 20)
                and E * T * x.dtype.itemsize <= (8 << 20))
    if use_flat:
        return _eca_forward_flat(x, length, weight, block_b, vmem_cap)
    # TODO(synk): for shapes where neither a 128-padded T nor the segment-matrix
    # trick is affordable (very large E with ragged T), a T-tiled two-pass
    # (gate then apply) structure would be needed; the (B, E, T) path below is
    # the safe general default.
    return _eca_forward_std(x, length, weight, block_b, vmem_cap)


# --------------------------------------------------------------------------- #
# Pure-JAX reference mirroring the PyTorch forward
# --------------------------------------------------------------------------- #
def eca_reference(x, length, weight):
    B, E, T = x.shape
    t = jnp.arange(T)[None, None, :]
    mask = (t < length[:, None, None]).astype(x.dtype)
    avg = jnp.sum(x * mask, axis=2) / length[:, None].astype(x.dtype)
    avg_p = jnp.pad(avg, ((0, 0), (PAD, PAD)))
    y = sum(weight[j] * avg_p[:, j:j + E] for j in range(K_SIZE))
    return x * jax.nn.sigmoid(y)[:, :, None]


if __name__ == "__main__":
    key = jax.random.PRNGKey(0)
    kw, k1, k2, k3, kl1, kl2, kl3 = jax.random.split(key, 7)

    # Conv1d(1, 1, 5, bias=False) weight (PyTorch (1,1,5) flattened), uniform
    # in +/- 1/sqrt(k_size) like Conv1d's default init.
    bound = 1.0 / np.sqrt(K_SIZE)
    weight = jax.random.uniform(kw, (K_SIZE,), minval=-bound, maxval=bound,
                                dtype=jnp.float32)

    cases = [
        # small ragged T -> flat lane-dense kernel, 2 grid steps
        (16, 32, 24, 8, k1, kl1),
        # T % 128 == 0 -> standard (B, E, T) kernel, 2 grid steps
        (4, 16, 128, 2, k2, kl2),
        # automatic block chooser, flat path, single step
        (4, 32, 24, None, k3, kl3),
    ]

    for B, E, T, bb, kx, kl in cases:
        x = jax.random.normal(kx, (B, E, T), dtype=jnp.float32)
        # lengths in [1, T]; length == 0 is deliberately excluded — the PyTorch
        # module would produce NaN there, the kernel guards with max(len, 1).
        length = jax.random.randint(kl, (B,), 1, T + 1, dtype=jnp.int32)

        out = eca_forward(x, length, weight, block_b=bb)
        jax.block_until_ready(out)

        ref = eca_reference(x, length, weight)
        np.testing.assert_allclose(np.asarray(out), np.asarray(ref),
                                   rtol=1e-4, atol=1e-4)

    print("KERNEL_OK")
</pallas_src>

<mosaic_0001>
module attributes {stable_mosaic.version = 11 : i64} {
  func.func @eca_flat_kernel(%arg0: i32, %arg1: memref<16x1xi32, #tpu.memory_space<vmem>>, %arg2: memref<1x768xi32, #tpu.memory_space<vmem>>, %arg3: memref<32x768xf32, #tpu.memory_space<vmem>>, %arg4: memref<5xf32, #tpu.memory_space<smem>>, %arg5: memref<8x768xf32, #tpu.memory_space<vmem>>, %arg6: memref<8x768xf32, #tpu.memory_space<vmem>>) attributes {dimension_semantics = [#tpu.dimension_semantics<parallel>], iteration_bounds = array<i64: 2>, scalar_prefetch = 0 : i64, scratch_operands = 0 : i64, tpu.core_type = #tpu.core_type<tc>, window_params = [{pipeline_mode = #tpu.pipeline_mode<synchronous>, transform_indices = @transform_0, window_bounds = array<i64: 16, 1>}, {pipeline_mode = #tpu.pipeline_mode<synchronous>, transform_indices = @transform_1, window_bounds = array<i64: 1, 768>}, {pipeline_mode = #tpu.pipeline_mode<synchronous>, transform_indices = @transform_2, window_bounds = array<i64: 32, 768>}, {transform_indices = @transform_3, window_bounds = array<i64: 5>}, {transform_indices = @transform_4, window_bounds = array<i64: 8, 768>}, {transform_indices = @transform_5, window_bounds = array<i64: 8, 768>}]} {
    %c8_i32 = arith.constant 8 : i32
    %0 = arith.muli %arg0, %c8_i32 : i32
    %1 = arith.index_cast %0 : i32 to index
    %c0 = arith.constant 0 : index
    %2 = vector.load %arg1[%1, %c0] : memref<16x1xi32, #tpu.memory_space<vmem>>, vector<8x1xi32>
    %c0_0 = arith.constant 0 : index
    %c0_1 = arith.constant 0 : index
    %3 = vector.load %arg2[%c0_0, %c0_1] : memref<1x768xi32, #tpu.memory_space<vmem>>, vector<1x768xi32>
    %4 = vector.broadcast %3 : vector<1x768xi32> to vector<8x768xi32>
    %5 = vector.broadcast %2 : vector<8x1xi32> to vector<8x768xi32>
    %6 = arith.cmpi slt, %4, %5 : vector<8x768xi32>
    %7 = arith.extui %6 : vector<8x768xi1> to vector<8x768xi32>
    %8 = arith.sitofp %7 : vector<8x768xi32> to vector<8x768xf32>
    %c0_2 = arith.constant 0 : index
    %c0_3 = arith.constant 0 : index
    %9 = vector.load %arg5[%c0_2, %c0_3] : memref<8x768xf32, #tpu.memory_space<vmem>>, vector<8x768xf32>
    %10 = arith.mulf %9, %8 : vector<8x768xf32>
    %c0_4 = arith.constant 0 : index
    %c0_5 = arith.constant 0 : index
    %11 = vector.load %arg3[%c0_4, %c0_5] : memref<32x768xf32, #tpu.memory_space<vmem>>, vector<32x768xf32>
    %12 = arith.truncf %10 : vector<8x768xf32> to vector<8x768xbf16>
    %13 = arith.extf %12 : vector<8x768xbf16> to vector<8x768xf32>
    %14 = arith.subf %10, %13 : vector<8x768xf32>
    %cst = arith.constant dense<0.000000e+00> : vector<8x32xf32>
    %15 = tpu.matmul %13, %11, %cst {dimension_numbers = #tpu.dot_dimension_numbers<[1], [1], [0], [0], [0, 0, 1, 0], [], []>} : vector<8x768xf32>, vector<32x768xf32>, vector<8x32xf32> -> vector<8x32xf32>
    %cst_6 = arith.constant dense<0.000000e+00> : vector<8x32xf32>
    %16 = tpu.matmul %14, %11, %cst_6 {dimension_numbers = #tpu.dot_dimension_numbers<[1], [1], [0], [0], [0, 0, 1, 0], [], []>} : vector<8x768xf32>, vector<32x768xf32>, vector<8x32xf32> -> vector<8x32xf32>
    %17 = arith.addf %15, %16 : vector<8x32xf32>
    %18 = arith.sitofp %2 : vector<8x1xi32> to vector<8x1xf32>
    %cst_7 = arith.constant 1.000000e+00 : f32
    %19 = vector.broadcast %cst_7 : f32 to vector<8x1xf32>
    %20 = arith.maximumf %18, %19 : vector<8x1xf32>
    %21 = tpu.reciprocal %20 : vector<8x1xf32> -> vector<8x1xf32>
    %22 = vector.broadcast %21 : vector<8x1xf32> to vector<8x32xf32>
    %23 = arith.mulf %17, %22 : vector<8x32xf32>
    %24 = tpu.iota {dimensions = array<i32: 1>} : vector<1x32xi32>
    %c2 = arith.constant 2 : index
    %25 = memref.load %arg4[%c2] : memref<5xf32, #tpu.memory_space<smem>>
    %26 = vector.broadcast %25 : f32 to vector<8x32xf32>
    %27 = arith.mulf %26, %23 : vector<8x32xf32>
    %c31_i32 = arith.constant 31 : i32
    %28 = tpu.dynamic_rotate %23 by %c31_i32 dim 1 : vector<8x32xf32>, i32 -> vector<8x32xf32>
    %c3 = arith.constant 3 : index
    %29 = memref.load %arg4[%c3] : memref<5xf32, #tpu.memory_space<smem>>
    %c31_i32_8 = arith.constant 31 : i32
    %30 = vector.broadcast %c31_i32_8 : i32 to vector<1x32xi32>
    %31 = arith.cmpi slt, %24, %30 : vector<1x32xi32>
    %cst_9 = arith.constant 0.000000e+00 : f32
    %32 = vector.shape_cast %31 : vector<1x32xi1> to vector<1x32xi1>
    %33 = vector.broadcast %32 : vector<1x32xi1> to vector<8x32xi1>
    %34 = vector.broadcast %cst_9 : f32 to vector<8x32xf32>
    %35 = arith.select %33, %28, %34 : vector<8x32xi1>, vector<8x32xf32>
    %36 = vector.broadcast %29 : f32 to vector<8x32xf32>
    %37 = arith.mulf %36, %35 : vector<8x32xf32>
    %38 = arith.addf %27, %37 : vector<8x32xf32>
    %c1_i32 = arith.constant 1 : i32
    %39 = tpu.dynamic_rotate %23 by %c1_i32 dim 1 : vector<8x32xf32>, i32 -> vector<8x32xf32>
    %c1 = arith.constant 1 : index
    %40 = memref.load %arg4[%c1] : memref<5xf32, #tpu.memory_space<smem>>
    %c1_i32_10 = arith.constant 1 : i32
    %41 = vector.broadcast %c1_i32_10 : i32 to vector<1x32xi32>
    %42 = arith.cmpi sge, %24, %41 : vector<1x32xi32>
    %cst_11 = arith.constant 0.000000e+00 : f32
    %43 = vector.shape_cast %42 : vector<1x32xi1> to vector<1x32xi1>
    %44 = vector.broadcast %43 : vector<1x32xi1> to vector<8x32xi1>
    %45 = vector.broadcast %cst_11 : f32 to vector<8x32xf32>
    %46 = arith.select %44, %39, %45 : vector<8x32xi1>, vector<8x32xf32>
    %47 = vector.broadcast %40 : f32 to vector<8x32xf32>
    %48 = arith.mulf %47, %46 : vector<8x32xf32>
    %49 = arith.addf %38, %48 : vector<8x32xf32>
    %c30_i32 = arith.constant 30 : i32
    %50 = tpu.dynamic_rotate %23 by %c30_i32 dim 1 : vector<8x32xf32>, i32 -> vector<8x32xf32>
    %c4 = arith.constant 4 : index
    %51 = memref.load %arg4[%c4] : memref<5xf32, #tpu.memory_space<smem>>
    %c30_i32_12 = arith.constant 30 : i32
    %52 = vector.broadcast %c30_i32_12 : i32 to vector<1x32xi32>
    %53 = arith.cmpi slt, %24, %52 : vector<1x32xi32>
    %cst_13 = arith.constant 0.000000e+00 : f32
    %54 = vector.shape_cast %53 : vector<1x32xi1> to vector<1x32xi1>
    %55 = vector.broadcast %54 : vector<1x32xi1> to vector<8x32xi1>
    %56 = vector.broadcast %cst_13 : f32 to vector<8x32xf32>
    %57 = arith.select %55, %50, %56 : vector<8x32xi1>, vector<8x32xf32>
    %58 = vector.broadcast %51 : f32 to vector<8x32xf32>
    %59 = arith.mulf %58, %57 : vector<8x32xf32>
    %60 = arith.addf %49, %59 : vector<8x32xf32>
    %c2_i32 = arith.constant 2 : i32
    %61 = tpu.dynamic_rotate %23 by %c2_i32 dim 1 : vector<8x32xf32>, i32 -> vector<8x32xf32>
    %c0_14 = arith.constant 0 : index
    %62 = memref.load %arg4[%c0_14] : memref<5xf32, #tpu.memory_space<smem>>
    %c2_i32_15 = arith.constant 2 : i32
    %63 = vector.broadcast %c2_i32_15 : i32 to vector<1x32xi32>
    %64 = arith.cmpi sge, %24, %63 : vector<1x32xi32>
    %cst_16 = arith.constant 0.000000e+00 : f32
    %65 = vector.shape_cast %64 : vector<1x32xi1> to vector<1x32xi1>
    %66 = vector.broadcast %65 : vector<1x32xi1> to vector<8x32xi1>
    %67 = vector.broadcast %cst_16 : f32 to vector<8x32xf32>
    %68 = arith.select %66, %61, %67 : vector<8x32xi1>, vector<8x32xf32>
    %69 = vector.broadcast %62 : f32 to vector<8x32xf32>
    %70 = arith.mulf %69, %68 : vector<8x32xf32>
    %71 = arith.addf %60, %70 : vector<8x32xf32>
    %72 = arith.negf %71 : vector<8x32xf32>
    %73 = math.exp %72 : vector<8x32xf32>
    %cst_17 = arith.constant 1.000000e+00 : f32
    %74 = vector.broadcast %cst_17 : f32 to vector<8x32xf32>
    %75 = arith.addf %74, %73 : vector<8x32xf32>
    %76 = arith.divf %74, %75 : vector<8x32xf32>
    %c0_18 = arith.constant 0 : index
    %c0_19 = arith.constant 0 : index
    %77 = vector.load %arg3[%c0_18, %c0_19] : memref<32x768xf32, #tpu.memory_space<vmem>>, vector<32x768xf32>
    %78 = arith.truncf %76 : vector<8x32xf32> to vector<8x32xbf16>
    %79 = arith.extf %78 : vector<8x32xbf16> to vector<8x32xf32>
    %80 = arith.subf %76, %79 : vector<8x32xf32>
    %cst_20 = arith.constant dense<0.000000e+00> : vector<8x768xf32>
    %81 = tpu.matmul %79, %77, %cst_20 {dimension_numbers = #tpu.dot_dimension_numbers<[1], [0], [0], [1], [0, 0, 1, 1], [], []>} : vector<8x32xf32>, vector<32x768xf32>, vector<8x768xf32> -> vector<8x768xf32>
    %cst_21 = arith.constant dense<0.000000e+00> : vector<8x768xf32>
    %82 = tpu.matmul %80, %77, %cst_21 {dimension_numbers = #tpu.dot_dimension_numbers<[1], [0], [0], [1], [0, 0, 1, 1], [], []>} : vector<8x32xf32>, vector<32x768xf32>, vector<8x768xf32> -> vector<8x768xf32>
    %83 = arith.addf %81, %82 : vector<8x768xf32>
    %c0_22 = arith.constant 0 : index
    %c0_23 = arith.constant 0 : index
    %84 = vector.load %arg5[%c0_22, %c0_23] : memref<8x768xf32, #tpu.memory_space<vmem>>, vector<8x768xf32>
    %85 = arith.mulf %84, %83 : vector<8x768xf32>
    %c0_24 = arith.constant 0 : index
    %c0_25 = arith.constant 0 : index
    %86 = vector.load %arg6[%c0_24, %c0_25] : memref<8x768xf32, #tpu.memory_space<vmem>>, vector<8x768xf32>
    tpu.vector_store %arg6[%c0_24, %c0_25], %85 {strides = array<i32>} : memref<8x768xf32, #tpu.memory_space<vmem>>, vector<8x768xf32>,
    return
  }
  func.func @transform_0(%arg0: i32) -> (i32, i32) {
    %c0_i32 = arith.constant 0 : i32
    %c0_i32_0 = arith.constant 0 : i32
    %c0_i32_1 = arith.constant 0 : i32
    return %c0_i32, %c0_i32_0 : i32, i32
  }
  func.func @transform_1(%arg0: i32) -> (i32, i32) {
    %c0_i32 = arith.constant 0 : i32
    %c0_i32_0 = arith.constant 0 : i32
    %c0_i32_1 = arith.constant 0 : i32
    return %c0_i32, %c0_i32_0 : i32, i32
  }
  func.func @transform_2(%arg0: i32) -> (i32, i32) {
    %c0_i32 = arith.constant 0 : i32
    %c0_i32_0 = arith.constant 0 : i32
    %c0_i32_1 = arith.constant 0 : i32
    return %c0_i32, %c0_i32_0 : i32, i32
  }
  func.func @transform_3(%arg0: i32) -> i32 {
    %c0_i32 = arith.constant 0 : i32
    %c0_i32_0 = arith.constant 0 : i32
    return %c0_i32 : i32
  }
  func.func @transform_4(%arg0: i32) -> (i32, i32) {
    %c0_i32 = arith.constant 0 : i32
    %c0_i32_0 = arith.constant 0 : i32
    return %arg0, %c0_i32 : i32, i32
  }
  func.func @transform_5(%arg0: i32) -> (i32, i32) {
    %c0_i32 = arith.constant 0 : i32
    %c0_i32_0 = arith.constant 0 : i32
    return %arg0, %c0_i32 : i32, i32
  }
}

</mosaic_0001>

<bundles_post_ra>
// kernel: tpu_custom_call.1
= control target key start
LH: loop header
LB: loop body
LE: loop exit
PB: predicated region body
PF: predicated region fallthrough
CT: control target
= control target key end

     0   :  { %10 = vsyncpa [#allocation3], 0  ;;  %s2113_s0 = inlined_call_operand.vmem [shape: s32[16,1], index: 0, kind: input, shape index: {}]   ;;  %s2114_s1 = inlined_call_operand.vmem [shape: s32[1,768], index: 1, kind: input, shape index: {}]   ;;  %s2115_s2 = inlined_call_operand.hbm [shape: f32[32,768], index: 2, kind: input, shape index: {}]   ;;  %s2116_s3 = inlined_call_operand.vmem [shape: f32[5], index: 3, kind: input, shape index: {}]   ;;  %s2117_s4 = inlined_call_operand.hbm [shape: f32[16,768], index: 4, kind: input, shape index: {}]   ;;  %s2118_s5 = inlined_call_operand.hbm [shape: f32[16,768], index: 5, kind: output, shape index: {}]  }
   0x1   :  { %11 = vsyncpa [#allocation5], 0 }
   0x2   :  { %12 = vsyncpa [#allocation8], 0 }
   0x3   :  { %14 = vsyncpa [#allocation8 + $0x1], 0 }
   0x4   :  { %15 = vsyncpa [#allocation4], 0 }
   0x5   :  { %17 = vsyncpa [#allocation4 + $0x1], 0  ;;  %s1727_s18 = smov 0   ;;  %s1729_s19 = smov 0  }
   0x6   :  { %s1731_s20 = smov 0   ;;  %s1733_s21 = smov 0  }
   0x7 LB: > { %s1748_s22 = sadd.s32 4294967295, %s1682_s21   ;;  %s1424_s23 = sadd.s32 4294967294, %s1682_s21   ;;  %s1682_s21 = sphi %s1733_s21, %s2142_s21   ;;  %s1678_s20 = sphi %s1731_s20, %s2141_s20   ;;  %s1674_s19 = sphi %s1729_s19, %s2140_s19   ;;  %s1670_s18 = sphi %s1727_s18, %s2139_s18  }
   0x8   : > { %p127_p0 = scmp.ne.s32.totalorder %s1674_s19, %s1670_s18  ;;  %p2119_p1 = scmp.eq.s32.totalorder %s1748_s22, 0 }
   0x9   : > { %p157_p3 = scmp.eq.s32.totalorder %s1424_s23, 1  ;;  %p1425_p5 = scmp.ge.s32.totalorder %s1682_s21, 1 }
   0xa   : > { %p1757_p4 = por %p2119_p1, %p127_p0  ;;  %p164_p7 = scmp.lt.s32.totalorder %s1682_s21, 3 }
   0xb   : > { %p1762_p6 = por %p157_p3, %p127_p0  ;;  %s1684_s27 = smov [#allocation2]  }
   0xc   : > { %s2123_s24 = scalar_select %p1757_p4, 1, 0 }
   0xd   : > { %s2124_s25 = scalar_select %p1762_p6, 1, 0 }
   0xe   : > { %p1767_p8 = pnand %p1425_p5, %p164_p7  ;;  %s182_s28 = sshll.u32 %s1684_s27, 4  ;;  %s183_s28 = int_to_ptr.vmem [resolvable:$true] %s182_s28 }
   0xf   : > { %s196_s6 = sshll.u32 %s2116_s3, 4  ;;  %s1552_s8 = scalar_lea.vmem %s183_s28, 3072  ;;  %s197_s6 = int_to_ptr.vmem [resolvable:$true] %s196_s6 }
  0x10   : > { %s2125_s26 = scalar_select %p1767_p8, 1, 0 }
  0x11   : > { %p1470_p9 = pneg %p1767_p8  ;;  %p1553_p13 = scmp.ne.s32.totalorder %s183_s28, %s1552_s8 }
  0x12   : > { %p1560_p5 = scmp.lt.s32.totalorder %s183_s28, %s183_s28  ;;  %p1561_p7 = scmp.lt.s32.totalorder %s1552_s8, %s1552_s8 }
  0x13   : > { %p1779_p11 = pnand %p1470_p9, %p2119_p1 }
  0x14   : > { %p1562_p10 = por %p1561_p7, %p1560_p5 }
  0x15   : > { %p1543_p12 = pneg %p1779_p11 }
  0x17   : > { %p1555_p0 = pnand %p1553_p13, %p1543_p12 }
  0x19   : > { %p1556_p3 = pneg %p1555_p0 }
  0x1b   : > { %p1563_p2 = pnand %p1562_p10, %p1556_p3 }
  0x1d   : > { %1566 = shalt.err (!%p1563_p2)
}
  0x1e   : > { %s1685_s9 = smov 768   ;;  %s1686_s10 = smov 48  }
  0x1f   : > { %1473 = dma.hbm_to_vmem [thread:$0]  (!%p1779_p11), %s2115_s2, 3072, %s183_s28, [#allocation3], %s1685_s9, %s1685_s9, %s1686_s10  }
  0x20   : > { %s1567_s13 = scalar_lea.vmem %s197_s6, 16  ;;  %p1575_p1 = scmp.lt.s32.totalorder %s197_s6, %s197_s6 }
  0x21   : > { %p1568_p9 = scmp.ne.s32.totalorder %s197_s6, %s1567_s13  ;;  %p1576_p6 = scmp.lt.s32.totalorder %s1567_s13, %s1567_s13 }
  0x23   : > { %p1570_p13 = pnand %p1568_p9, %p1543_p12  ;;  %p1577_p5 = por %p1576_p6, %p1575_p1 }
  0x25   : > { %p1571_p0 = pneg %p1570_p13 }
  0x27   : > { %p1578_p10 = pnand %p1577_p5, %p1571_p0 }
  0x29   : > { %1581 = shalt.err (!%p1578_p10)
}
  0x2a   : > { %s1687_s14 = smov [#allocation6]   ;;  %s1799_s15 = sadd.s32 1, %s1682_s21  }
  0x2b   : > { %1476 = dma.vmem_to_smem (!%p1779_p11), %s197_s6, 16, %s1687_s14, [#allocation5]  }
  0x2c   : > { %s114_s16 = sadd.s32 1, %s1678_s20  ;;  %s111_s17 = ssub.s32 %s1682_s21, %s1799_s15 }
  0x2d   : > { %p121_p1 = scmp.ne.s32.totalorder %s1678_s20, %s1674_s19  ;;  %p112_p2 = scmp.eq.s32.totalorder %s111_s17, 0 }
  0x2e   : > { %p122_p6 = scmp.eq.s32.totalorder %s1682_s21, 0  ;;  %p2127_p12 = scmp.eq.s32.totalorder %s1748_s22, 1 }
  0x2f   : > { %p1487_p7 = scmp.lt.s32.totalorder %s1682_s21, 2  ;;  %s207_s28 = sand.u32 1, %s1678_s20  }
  0x30   : > { %p1809_p3 = por %p2127_p12, %p121_p1  ;;  %p123_p9 = por %p122_p6, %p121_p1 }
  0x31   : > { %s1815_s27 = scalar_select %p112_p2, %s1678_s20, %s114_s16  }
  0x32   : > { %s2128_s23 = scalar_select %p1809_p3, 1, 0 }
  0x33   : > { %s1454_s29 = smul.u32 48, %s207_s28  ;;  %p1819_p11 = pnand %p1487_p7, %p123_p9 }
  0x34   : > { %s1455_s30 = smul.u32 768, %s1682_s21  ;;  %s208_s12 = scalar_lea.sflag [#allocation8], %s207_s28 }
  0x35   : > { %s211_s10 = scalar_lea.vmem [#allocation7], %s1454_s29  ;;  %p1584_p0 = pneg %p1819_p11 }
  0x36   : > { %s1826_s9 = scalar_lea.hbm %s2117_s4, %s1455_s30  ;;  %s219_s11 = sshll.u32 %s211_s10, 4  ;;  %s220_s11 = int_to_ptr.vmem [resolvable:$true] %s219_s11 }
  0x37   : > { %s1582_s13 = scalar_lea.hbm %s1826_s9, 768  ;;  %s1587_s17 = scalar_lea.hbm %s2117_s4, 1536 }
  0x38   : > { %p1583_p13 = scmp.ne.s32.totalorder %s1826_s9, %s1582_s13  ;;  %p1588_p1 = scmp.lt.s32.totalorder %s1826_s9, %s2117_s4 }
  0x39   : > { %p1589_p2 = scmp.lt.s32.totalorder %s1587_s17, %s1582_s13 }
  0x3a   : > { %p1585_p5 = pnand %p1584_p0, %p1583_p13 }
  0x3b   : > { %p1590_p6 = por %p1589_p2, %p1588_p1 }
  0x3c   : > { %p1586_p10 = pneg %p1585_p5 }
  0x3e   : > { %p1591_p12 = pnand %p1590_p6, %p1586_p10 }
  0x40   : > { %1594 = shalt.err (!%p1591_p12)
}
  0x41   : > { %s1595_s29 = scalar_lea.vmem %s220_s11, 768  ;;  %s1688_s28 = smov [#allocation7]  }
  0x42   : > { %p1596_p7 = scmp.ne.s32.totalorder %s220_s11, %s1595_s29  ;;  %s1600_s8 = sshll.u32 %s1688_s28, 4  ;;  %s1601_s8 = int_to_ptr.vmem [resolvable:$false] %s1600_s8 }
  0x43   : > { %s1602_s10 = scalar_lea.vmem %s1601_s8, 1536  ;;  %p1603_p13 = scmp.lt.s32.totalorder %s220_s11, %s1601_s8 }
  0x44   : > { %p1598_p9 = pnand %p1596_p7, %p1584_p0  ;;  %p1604_p5 = scmp.lt.s32.totalorder %s1602_s10, %s1595_s29 }
  0x46   : > { %p1599_p3 = pneg %p1598_p9  ;;  %p1605_p4 = por %p1604_p5, %p1603_p13 }
  0x48   : > { %p1606_p8 = pnand %p1605_p4, %p1599_p3 }
  0x4a   : > { %1609 = shalt.err (!%p1606_p8)
}
  0x4b   : > { %1480 = dma.hbm_to_vmem [thread:$0]  (!%p1819_p11), %s1826_s9, 768, %s220_s11, %s208_s12  }
  0x4c   : > { %p2130_p10 = scmp.ne.s32.totalorder %s2125_s26, 0 }
  0x4d   : > { %p2131_p1 = scmp.eq.s32.totalorder (!%p2130_p10), %s1748_s22, 0 }
  0x4e   : > { %228 = sbr.rel (%p2130_p10) target bundleno = 1091 (0x443), region = 40 }
  0x53   : > { %1653 = dma.done.wait (%p2131_p1), [#allocation3], 3072   ;;  %p2132_p0 = pmov %p2131_p1 }
  0x55   : > { %1655 = vsyncadd (%p2132_p0), [#allocation3], 4294964224  ;;  %p2133_p2 = pmov %p2132_p0 }
  0x56   : > { %p2134_p6 = pmov %p2132_p0 }
  0x57   : > { %1657 = dma.done.wait (%p2133_p2), [#allocation5], 16  }
  0x58   : > { %1659 = vsyncadd (%p2134_p6), [#allocation5], 4294967280  ;;  %s1853_s6 = sand.u32 1, %s1674_s19   ;;  %p2135_p4 = scmp.ne.s32.totalorder %s2123_s24, 0 }
  0x59   : > { %s1456_s26 = smul.u32 48, %s1853_s6  ;;  %s239_s9 = scalar_lea.sflag [#allocation8], %s1853_s6 }
  0x5b   : > { %s1859_s11 = scalar_lea.vmem [#allocation7], %s1456_s26 }
  0x5c   : > { %1661 = dma.done.wait (%p2135_p4), %s239_s9, 768  }
  0x5d   : > { %1663 = vsyncadd (%p2135_p4), %s239_s9, 4294966528 }
  0x5e   : > { %247 = sfence }
  0x5f   : > { %s1433_s12 = sshll.u32 %s1748_s22, 3  ;;  %v1866_v0 = vld [vmem:[#allocation2 + $0x98] sm:$0xff]  ;;  %v1868_v1 = vld [vmem:[#allocation2 + $0xa8] sm:$0xff]  ;;  %v1870_v2 = vld [vmem:[#allocation2 + $0x90] sm:$0xff]  ;;  %v1689_v3 = vmov 0   ;;  %v274_v22 = vlaneseq  ;;  %v1690_v41 = vmov 0.0  }
  0x60   : > { %1534 = vset.pattern.permute.xlu0 %v1689_v3  ;;  %s271_s16 = scalar_lea.vmem %s2113_s0, %s1433_s12  ;;  %397 = vmatprep.subr.mxu0 %v1866_v0  ;;  %v1876_v4 = vld [vmem:[#allocation2 + $0xa0] sm:$0xff]  ;;  %v1878_v5 = vld [vmem:[#allocation2 + $0x68] sm:$0xff]  ;;  %v1880_v6 = vld [vmem:[#allocation2 + $0x78] sm:$0xff]  ;;  %s1691_s7 = smov 32   ;;  %vm807_vm6 = vcmask 1047808   ;;  %vm868_vm11 = vcmask 261120  }
  0x61   : > { %v272_v7 = vld [vmem:[%s271_s16] sm:$0xff]  ;;  %467 = vmatprep.subr.mxu1 %v1868_v1  ;;  %398 = vmatpush1.xpose.msra.mxu0 %v1870_v2  ;;  %v1889_v10 = vld [vmem:[#allocation2 + $0x70] sm:$0xff]  ;;  %v1891_v11 = vld [vmem:[#allocation2 + $0x38] sm:$0xff]  ;;  %v275_v23 = vshrl.u32 %v274_v22, 7  ;;  %s1692_s30 = smov 97   ;;  %s1693_s29 = smov 127  }
  0x62   : > { %299 = vperm.xlu0 %1534, %v272_v7   ;;  %v793_v8 = vcvt.s32.f32 %v272_v7  ;;  %468 = vmatpush1.xpose.msra.mxu1 %v1876_v4  ;;  %v1885_v9 = vld [vmem:[#allocation2 + $0x60] sm:$0xff]  ;;  %v1893_v13 = vld [vmem:[#allocation2 + $0x48] sm:$0xff]  ;;  %v1898_v14 = vld [vmem:[#allocation2 + $0x30] sm:$0xff]  ;;  %s1694_s28 = smov 98   ;;  %s1695_s8 = smov 126  }
  0x63   : > { %399 = vmatprep.subr.mxu0 %v1878_v5  ;;  %469 = vmatprep.subr.mxu1 %v1880_v6  ;;  %v1901_v15 = vld [vmem:[#allocation2 + $0x40] sm:$0xff]  ;;  %v1903_v16 = vld [vmem:[#allocation2 + $0x8] sm:$0xff]  ;;  %v1905_v17 = vld [vmem:[#allocation2 + $0x18] sm:$0xff]  ;;  %v280_v24 = vsub.s32 1, %v275_v23  ;;  %v288_v25 = vsub.s32 3, %v275_v23  ;;  %v276_v26 = vsub.s32 0, %v275_v23 }
  0x64   : > { %v794_v12 = vmax.f32 %v793_v8, 1.0  ;;  %v1910_v18 = vld [vmem:[#allocation2] sm:$0xff]  ;;  %v1913_v19 = vld [vmem:[#allocation2 + $0x10] sm:$0xff]  ;;  %v1915_v20 = vld [vmem:[#allocation2 + $0xb8] sm:$0xff]  ;;  %v284_v27 = vsub.s32 2, %v275_v23  ;;  %v296_v29 = vsub.s32 5, %v275_v23 }
  0x65   : > { %400 = vmatpush1.xpose.msra.mxu0 %v1885_v9  ;;  %v273_v28 = vld [vmem:[%s2114_s1] sm:$0x3f]  ;;  %v1926_v34 = vld [vmem:[%s1859_s11 + $0x8] sm:$0xff]  ;;  %v1929_v36 = vld [vmem:[%s1859_s11 + $0x18] sm:$0xff]  ;;  %v292_v40 = vsub.s32 4, %v275_v23  ;;  %s1440_s10 = sld [smem:[#allocation6 + $0x2]] }
  0x66   : > { %1535 = vrcp.f32 %v794_v12  ;;  %470 = vmatpush1.xpose.msra.mxu1 %v1889_v10  ;;  %401 = vmatprep.subr.mxu0 %v1891_v11  ;;  %v281_v30 = vrot.slane %v273_v28, %v280_v24  ;;  %v289_v31 = vrot.slane %v273_v28, %v288_v25  ;;  %v277_v32 = vrot.slane %v273_v28, %v276_v26  ;;  %v1932_v37 = vld [vmem:[%s1859_s11] sm:$0xff]  ;;  %v1935_v38 = vld [vmem:[%s1859_s11 + $0x10] sm:$0xff]  ;;  %v1946_v55 = vld [vmem:[%s1859_s11 + $0x28] sm:$0xff]  ;;  %s1441_s9 = sld [smem:[#allocation6 + $0x3]]  ;;  %s269_s14 = scalar_lea.vmem [#allocation9], %s1456_s26 }
  0x67   : > { %471 = vmatprep.subr.mxu1 %v1893_v13  ;;  %v285_v33 = vrot.slane %v273_v28, %v284_v27  ;;  %v297_v39 = vrot.slane %v273_v28, %v296_v29  ;;  %v293_v50 = vrot.slane %v273_v28, %v292_v40  ;;  %v1953_v8 = vld [vmem:[#allocation2 + $0xb0] sm:$0xff]  ;;  %v1964_v27 = vld [vmem:[#allocation2 + $0x80] sm:$0xff]  ;;  %v1968_v29 = vld [vmem:[#allocation2 + $0x58] sm:$0xff]  ;;  %s1443_s12 = sld [smem:[#allocation6 + $0x4]]  ;;  %s1457_s16 = smul.u32 768, %s1748_s22 }
  0x68   : > { %v1959_v24 = vld [vmem:[%s1859_s11 + $0x20] sm:$0xff]  ;;  %s1442_s11 = sld [smem:[#allocation6 + $0x1]]  ;;  %s1328_s24 = sshll.u32 %s269_s14, 4  ;;  %s1329_s24 = int_to_ptr.vmem [resolvable:$true] %s1328_s24 }
  0x69   : > { %402 = vmatpush1.xpose.msra.mxu0 %v1898_v14  ;;  %s848_s13 = sld [smem:[#allocation6]]  ;;  %s2076_s22 = scalar_lea.hbm %s2118_s5, %s1457_s16 }
  0x6a   : > { %472 = vmatpush1.xpose.msra.mxu1 %v1901_v15  ;;  %403 = vmatprep.subr.mxu0 %v1903_v16  ;;  %p2136_p3 = scmp.ne.s32.totalorder %s2128_s23, 0 }
  0x6b   : > { %473 = vmatprep.subr.mxu1 %v1905_v17 }
  0x6d   : > { %404 = vmatpush1.xpose.msra.mxu0 %v1910_v18 }
  0x6e   : > { %474 = vmatpush1.xpose.msra.mxu1 %v1913_v19  ;;  %537 = vmatprep.subr.mxu0 %v1915_v20 }
  0x6f   : > { %607 = vmatprep.subr.mxu1 %v1866_v0 }
  0x73   : > { %v1536_v21 = vpop.eup %1535 }
  0x74   : > { %798 = vperm.xlu0 %1534, %v1536_v21   ;;  %v1955_v21 = vld [vmem:[#allocation2 + $0x88] sm:$0xff] }
  0xdd   : > { %v300_v35 = vpop.permute.xlu0 %299 }
  0xde   : > { %vm302_vm0 = vcmp.lt.s32.totalorder %v281_v30, %v300_v35  ;;  %vm304_vm1 = vcmp.lt.s32.totalorder %v289_v31, %v300_v35  ;;  %vm301_vm2 = vcmp.lt.s32.totalorder %v277_v32, %v300_v35  ;;  %vm303_vm3 = vcmp.lt.s32.totalorder %v285_v33, %v300_v35  ;;  %v1974_v30 = vld [vmem:[#allocation2 + $0x50] sm:$0xff]  ;;  %v1976_v32 = vld [vmem:[#allocation2 + $0x28] sm:$0xff]  ;;  %v1982_v33 = vld [vmem:[#allocation2 + $0x20] sm:$0xff] }
  0xdf   : > { %v1435_v42 = vsel %vm302_vm0, 1.0, %v1690_v41  ;;  %v1437_v43 = vsel %vm304_vm1, 1.0, %v1690_v41  ;;  %v1434_v44 = vsel %vm301_vm2, 1.0, %v1690_v41  ;;  %v1436_v45 = vsel %vm303_vm3, 1.0, %v1690_v41 }
  0xe0   : > { %v326_v46 = vmul.f32 %v1435_v42, %v1926_v34  ;;  %v328_v47 = vmul.f32 %v1437_v43, %v1929_v36  ;;  %v325_v48 = vmul.f32 %v1434_v44, %v1932_v37  ;;  %v327_v49 = vmul.f32 %v1436_v45, %v1935_v38 }
  0xe1   : > { %vm306_vm4 = vcmp.lt.s32.totalorder %v297_v39, %v300_v35  ;;  %vm305_vm5 = vcmp.lt.s32.totalorder %v293_v50, %v300_v35 }
  0xe2   : > { %v356_v51 = vpack.c.bf16 %v326_v46, %v326_v46  ;;  %v358_v52 = vpack.c.bf16 %v328_v47, %v328_v47  ;;  %v355_v53 = vpack.c.bf16 %v325_v48, %v325_v48  ;;  %v357_v54 = vpack.c.bf16 %v327_v49, %v327_v49 }
  0xe3   : > { %v1439_v56 = vsel %vm306_vm4, 1.0, %v1690_v41  ;;  %v1438_v23 = vsel %vm305_vm5, 1.0, %v1690_v41 }
  0xe4   : > { %v362_v57 = vunpack.c.l.bf16 %v356_v51  ;;  %v364_v58 = vunpack.c.l.bf16 %v358_v52  ;;  %v361_v59 = vunpack.c.l.bf16 %v355_v53  ;;  %v1949_v60 = vunpack.c.l.bf16 %v357_v54 }
  0xe5   : > { %v330_v61 = vmul.f32 %v1439_v56, %v1946_v55  ;;  %v329_v28 = vmul.f32 %v1438_v23, %v1959_v24 }
  0xe6   : > { %v368_v62 = vsub.f32 %v326_v46, %v362_v57  ;;  %v370_v63 = vsub.f32 %v328_v47, %v364_v58  ;;  %v367_v3 = vsub.f32 %v325_v48, %v361_v59  ;;  %v369_v7 = vsub.f32 %v327_v49, %v1949_v60 }
  0xe7   : > { %v360_v12 = vpack.c.bf16 %v330_v61, %v330_v61  ;;  %v359_v31 = vpack.c.bf16 %v329_v28, %v329_v28 }
  0xe8   : > { %437 = vmatprep.mubr.f32.mxu0 %v368_v62  ;;  %507 = vmatprep.mubr.f32.mxu1 %v370_v63 }
  0xe9   : > { %438 = vmatmul.mubr.f32.vlgmr.msra.gmra.mxu0 %v367_v3  ;;  %508 = vmatmul.mubr.f32.vlgmr.msra.gmra.mxu1 %v369_v7  ;;  %v366_v25 = vunpack.c.l.bf16 %v360_v12  ;;  %v365_v35 = vunpack.c.l.bf16 %v359_v31  ;;  %v803_v3 = vand.u32 127, %v274_v22  ;;  %v805_v7 = vstv %s1440_s10 }
  0xea   : > { %538 = vmatpush1.xpose.msra.mxu0 %v1953_v8  ;;  %608 = vmatpush1.xpose.msra.mxu1 %v1870_v2  ;;  %v823_v12 = vstv %s1441_s9 }
  0xeb   : > { %v372_v26 = vsub.f32 %v330_v61, %v366_v25  ;;  %647 = vmatprep.mubr.f32.mxu1 %v362_v57  ;;  %539 = vmatprep.subr.mxu0 %v1955_v21  ;;  %v371_v39 = vsub.f32 %v329_v28, %v365_v35  ;;  %vm827_vm7 = vcmp.ge.s32.totalorder %v803_v3, 1  ;;  %vm815_vm8 = vcmp.lt.s32.totalorder %v803_v3, 31 }
  0xec   : > { %609 = vmatprep.subr.mxu1 %v1878_v5  ;;  %vm849_vm9 = vcmp.ge.s32.totalorder %v803_v3, 2  ;;  %vm838_vm10 = vcmp.lt.s32.totalorder %v803_v3, 30 }
  0xed   : > { %577 = vmatprep.mubr.f32.mxu0 %v372_v26  ;;  %v834_v26 = vstv %s1442_s11 }
  0xee   : > { %540 = vmatpush1.xpose.msra.mxu0 %v1964_v27  ;;  %610 = vmatpush1.xpose.msra.mxu1 %v1885_v9 }
  0xef   : > { %541 = vmatprep.subr.mxu0 %v1968_v29  ;;  %611 = vmatprep.subr.mxu1 %v1891_v11 }
  0xf2   : > { %542 = vmatpush1.xpose.msra.mxu0 %v1974_v30  ;;  %612 = vmatpush1.xpose.msra.mxu1 %v1898_v14 }
  0xf3   : > { %543 = vmatprep.subr.mxu0 %v1976_v32  ;;  %613 = vmatprep.subr.mxu1 %v1903_v16 }
  0xf6   : > { %544 = vmatpush1.xpose.msra.mxu0 %v1982_v33  ;;  %614 = vmatpush1.xpose.msra.mxu1 %v1910_v18 }
  0xf7   : > { %677 = vmatprep.subr.mxu0 %v1868_v1  ;;  %747 = vmatprep.subr.mxu1 %v1915_v20 }
  0xf9   : > { %578 = vmatmul.mubr.f32.vlgmr.msra.gmra.mxu0 %v371_v39  ;;  %648 = vmatmul.mubr.f32.vlgmr.msra.gmra.mxu1 %v361_v59  ;;  %v799_v59 = vpop.permute.xlu0 %798 }
  0xfa   : > { %678 = vmatpush1.xpose.msra.mxu0 %v1876_v4  ;;  %717 = vmatprep.mubr.f32.mxu0 %v364_v58 }
  0xfb   : > { %748 = vmatpush1.xpose.msra.mxu1 %v1953_v8  ;;  %787 = vmatprep.mubr.f32.mxu1 %v366_v25 }
  0xfc   : > { %679 = vmatprep.subr.mxu0 %v1880_v6  ;;  %749 = vmatprep.subr.mxu1 %v1955_v21 }
  0xfe   : > { %680 = vmatpush1.xpose.msra.mxu0 %v1889_v10 }
  0xff   : > { %750 = vmatpush1.xpose.msra.mxu1 %v1964_v27  ;;  %681 = vmatprep.subr.mxu0 %v1893_v13 }
 0x100   : > { %751 = vmatprep.subr.mxu1 %v1968_v29 }
 0x102   : > { %682 = vmatpush1.xpose.msra.mxu0 %v1901_v15 }
 0x103   : > { %752 = vmatpush1.xpose.msra.mxu1 %v1974_v30  ;;  %683 = vmatprep.subr.mxu0 %v1905_v17 }
 0x104   : > { %753 = vmatprep.subr.mxu1 %v1976_v32 }
 0x106   : > { %684 = vmatpush1.xpose.msra.mxu0 %v1913_v19 }
 0x107   : > { %754 = vmatpush1.xpose.msra.mxu1 %v1982_v33  ;;  %896 = vmatprep.subr.mxu0 %v1866_v0 }
 0x108   : > { %967 = vmatprep.subr.mxu1 %v1868_v1 }
 0x109   : > { %718 = vmatmul.mubr.f32.vlgmr.msra.gmra.mxu0 %v1949_v60 }
 0x10a   : > { %788 = vmatmul.mubr.f32.vlgmr.msra.gmra.mxu1 %v365_v35  ;;  %897 = vmatpush1.msra.mxu0 %v1870_v2 }
 0x10b   : > { %968 = vmatpush1.msra.mxu1 %v1876_v4  ;;  %898 = vmatprep.subr.mxu0 %v1878_v5 }
 0x10c   : > { %969 = vmatprep.subr.mxu1 %v1880_v6  ;;  %899 = vmatpush1.msra.mxu0 %v1885_v9 }
 0x10d   : > { %970 = vmatpush1.msra.mxu1 %v1889_v10  ;;  %900 = vmatprep.subr.mxu0 %v1891_v11 }
 0x10e   : > { %971 = vmatprep.subr.mxu1 %v1893_v13  ;;  %901 = vmatpush1.msra.mxu0 %v1898_v14 }
 0x10f   : > { %972 = vmatpush1.msra.mxu1 %v1901_v15  ;;  %902 = vmatprep.subr.mxu0 %v1903_v16 }
 0x110   : > { %973 = vmatprep.subr.mxu1 %v1905_v17  ;;  %903 = vmatpush1.msra.mxu0 %v1910_v18 }
 0x111   : > { %974 = vmatpush1.msra.mxu1 %v1913_v19  ;;  %936 = vmatprep.mubr.f32.mxu0 %v1690_v41 }
 0x112   : > { %1007 = vmatprep.mubr.f32.mxu1 %v1690_v41  ;;  %1038 = vmatprep.subr.mxu0 %v1915_v20 }
 0x113   : > { %1112 = vmatprep.subr.mxu1 %v1866_v0 }
 0x1a9   : > { %v439_v40 = vpop.f32.mrf.mxu0  ;;  %v509_v42 = vpop.f32.mrf.mxu1 }
 0x1aa   : > { %v510_v49 = vadd.f32 %v509_v42, %v439_v40  ;;  %v845_v40 = vstv %s1443_s12 }
 0x1ab   : > { %v441_v43 = vpop.f32.mrf.mxu0  ;;  %v511_v44 = vpop.f32.mrf.mxu1 }
 0x1b9   : > { %v579_v45 = vpop.f32.mrf.mxu0  ;;  %v649_v46 = vpop.f32.mrf.mxu1 }
 0x1ba   : > { %v580_v50 = vadd.f32 %v579_v45, %v510_v49  ;;  %v856_v45 = vstv %s848_s13 }
 0x1bb   : > { %v581_v47 = vpop.f32.mrf.mxu0  ;;  %v651_v48 = vpop.f32.mrf.mxu1 }
 0x1bc   : > { %v650_v51 = vadd.f32 %v649_v46, %v580_v50 }
 0x1c9   : > { %v719_v52 = vpop.f32.mrf.mxu0 }
 0x1ca   : > { %v720_v53 = vadd.f32 %v719_v52, %v650_v51  ;;  %v789_v54 = vpop.f32.mrf.mxu1 }
 0x1cb   : > { %v721_v56 = vpop.f32.mrf.mxu0 }
 0x1cc   : > { %v790_v57 = vadd.f32 %v789_v54, %v720_v53  ;;  %v791_v58 = vpop.f32.mrf.mxu1 }
 0x1ce   : > { %v801_v60 = vmul.f32 %v799_v59, %v790_v57 }
 0x1d0   : > { %808 = vrot.lane.b32.xlu1 %v801_v60, %s1691_s7  ;;  %v806_v35 = vmul.f32 %v805_v7, %v801_v60 }
 0x242   : > { %v809_v0 = vpop.permute.xlu1 %808 }
 0x243   : > { %v810_v61 = vsel %vm807_vm6, %v809_v0, %v801_v60 }
 0x244   : > { %811 = vrot.lane.b32.xlu1 %v810_v61, %s1691_s7  ;;  %s1314_s7 = scalar_lea.sflag [#allocation4], %s1853_s6 }
 0x2b6   : > { %v812_v62 = vpop.permute.xlu1 %811 }
 0x2b7   : > { %v813_v63 = vsel %vm807_vm6, %v812_v62, %v801_v60 }
 0x2b8   : > { %830 = vrot.lane.b32.xlu1 %v813_v63, %s1692_s30  ;;  %819 = vrot.lane.b32.xlu0 %v813_v63, %s1693_s29  ;;  %s1610_s30 = scalar_lea.vmem %s1329_s24, 768  ;;  %s1696_s29 = smov [#allocation9]  }
 0x2b9   : > { %p1611_p8 = scmp.ne.s32.totalorder %s1329_s24, %s1610_s30 }
 0x2bb   : > { %p1612_p11 = pnand %p1611_p8, %p2136_p3 }
 0x2bc   : > { %852 = vrot.lane.b32.xlu1 %v813_v63, %s1694_s28  ;;  %841 = vrot.lane.b32.xlu0 %v813_v63, %s1695_s8  ;;  %s1614_s28 = sshll.u32 %s1696_s29, 4  ;;  %s1615_s28 = int_to_ptr.vmem [resolvable:$false] %s1614_s28 }
 0x2bd   : > { %p1613_p12 = pneg %p1612_p11  ;;  %s1616_s8 = scalar_lea.vmem %s1615_s28, 1536 }
 0x2be   : > { %p1617_p7 = scmp.lt.s32.totalorder %s1329_s24, %s1615_s28  ;;  %p1618_p9 = scmp.lt.s32.totalorder %s1616_s8, %s1610_s30 }
 0x2c0   : > { %p1619_p13 = por %p1618_p9, %p1617_p7 }
 0x2c2   : > { %p1620_p5 = pnand %p1619_p13, %p1613_p12 }
 0x32a   : > { %v831_v23 = vpop.permute.xlu1 %830  ;;  %v820_v25 = vpop.permute.xlu0 %819 }
 0x32b   : > { %v833_v28 = vsel %vm827_vm7, %v831_v23, 0.0  ;;  %v822_v31 = vsel %vm815_vm8, %v820_v25, 0.0 }
 0x32c   : > { %v824_v39 = vmul.f32 %v823_v12, %v822_v31  ;;  %v835_v42 = vmul.f32 %v834_v26, %v833_v28 }
 0x32e   : > { %v825_v43 = vadd.f32 %v824_v39, %v806_v35  ;;  %v853_v44 = vpop.permute.xlu1 %852  ;;  %v842_v22 = vpop.permute.xlu0 %841 }
 0x32f   : > { %v855_v46 = vsel %vm849_vm9, %v853_v44, 0.0  ;;  %v844_v47 = vsel %vm838_vm10, %v842_v22, 0.0 }
 0x330   : > { %v836_v48 = vadd.f32 %v835_v42, %v825_v43  ;;  %v846_v49 = vmul.f32 %v845_v40, %v844_v47  ;;  %v857_v50 = vmul.f32 %v856_v45, %v855_v46 }
 0x332   : > { %v847_v51 = vadd.f32 %v846_v49, %v836_v48 }
 0x334   : > { %v858_v52 = vadd.f32 %v857_v50, %v847_v51 }
 0x336   : > { %v1444_v53 = vmul.f32 -1.442695, %v858_v52 }
 0x338   : > { %1537 = vpow2.f32 %v1444_v53 }
 0x345   : > { %v1538_v54 = vpop.eup %1537 }
 0x346   : > { %v862_v56 = vadd.f32 1.0, %v1538_v54 }
 0x348   : > { %1539 = vrcp.f32 %v862_v56 }
 0x355   : > { %v1540_v57 = vpop.eup %1539 }
 0x356   : > { %v865_v58 = vpack.c.bf16 %v1540_v57, %v1540_v57 }
 0x358   : > { %v866_v59 = vunpack.c.l.bf16 %v865_v58 }
 0x35a   : > { %v867_v60 = vsub.f32 %v1540_v57, %v866_v59 }
 0x35c   : > { %1445 = vmatmul.mubr.msk.f32.vlgmr.msra.gmra.mxu0 %vm868_vm11, %v867_v60  ;;  %1446 = vmatmul.mubr.msk.f32.vlgmr.msra.gmra.mxu1 %vm868_vm11, %v867_v60 }
 0x35d   : > { %1039 = vmatpush1.msra.mxu0 %v1953_v8  ;;  %1113 = vmatpush1.msra.mxu1 %v1870_v2 }
 0x35e   : > { %1040 = vmatprep.subr.mxu0 %v1955_v21  ;;  %1114 = vmatprep.subr.mxu1 %v1878_v5 }
 0x35f   : > { %1041 = vmatpush1.msra.mxu0 %v1964_v27  ;;  %1115 = vmatpush1.msra.mxu1 %v1885_v9 }
 0x360   : > { %1042 = vmatprep.subr.mxu0 %v1968_v29  ;;  %1116 = vmatprep.subr.mxu1 %v1891_v11 }
 0x361   : > { %1043 = vmatpush1.msra.mxu0 %v1974_v30  ;;  %1117 = vmatpush1.msra.mxu1 %v1898_v14 }
 0x362   : > { %1044 = vmatprep.subr.mxu0 %v1976_v32  ;;  %1118 = vmatprep.subr.mxu1 %v1903_v16 }
 0x363   : > { %1045 = vmatpush1.msra.mxu0 %v1982_v33  ;;  %1078 = vmatprep.mubr.f32.mxu0 %v1690_v41 }
 0x364   : > { %1119 = vmatpush1.msra.mxu1 %v1910_v18  ;;  %1152 = vmatprep.mubr.f32.mxu1 %v1690_v41 }
 0x365   : > { %1447 = vmatmul.mubr.msk.f32.vlgmr.msra.gmra.mxu0 %vm868_vm11, %v867_v60  ;;  %1448 = vmatmul.mubr.msk.f32.vlgmr.msra.gmra.mxu1 %vm868_vm11, %v866_v59 }
 0x366   : > { %1183 = vmatprep.subr.mxu0 %v1868_v1  ;;  %1254 = vmatprep.subr.mxu1 %v1915_v20 }
 0x367   : > { %1184 = vmatpush1.msra.mxu0 %v1876_v4  ;;  %1255 = vmatpush1.msra.mxu1 %v1953_v8 }
 0x368   : > { %1185 = vmatprep.subr.mxu0 %v1880_v6  ;;  %1256 = vmatprep.subr.mxu1 %v1955_v21 }
 0x369   : > { %1186 = vmatpush1.msra.mxu0 %v1889_v10  ;;  %1257 = vmatpush1.msra.mxu1 %v1964_v27 }
 0x36a   : > { %1187 = vmatprep.subr.mxu0 %v1893_v13  ;;  %1258 = vmatprep.subr.mxu1 %v1968_v29 }
 0x36b   : > { %1188 = vmatpush1.msra.mxu0 %v1901_v15  ;;  %1259 = vmatpush1.msra.mxu1 %v1974_v30 }
 0x36c   : > { %1189 = vmatprep.subr.mxu0 %v1905_v17  ;;  %1260 = vmatprep.subr.mxu1 %v1976_v32 }
 0x36d   : > { %1190 = vmatpush1.msra.mxu0 %v1913_v19  ;;  %1223 = vmatprep.mubr.f32.mxu0 %v1690_v41 }
 0x36e   : > { %1261 = vmatpush1.msra.mxu1 %v1982_v33  ;;  %1294 = vmatprep.mubr.f32.mxu1 %v1690_v41 }
 0x36f   : > { %1449 = vmatmul.mubr.msk.f32.vlgmr.msra.gmra.mxu0 %vm868_vm11, %v866_v59  ;;  %1450 = vmatmul.mubr.msk.f32.vlgmr.msra.gmra.mxu1 %vm868_vm11, %v866_v59 }
 0x41c   : > { %v1009_v1 = vpop.f32.mrf.mxu1  ;;  %v938_v2 = vpop.f32.mrf.mxu0 }
 0x41e   : > { %v1011_v4 = vpop.f32.mrf.mxu1  ;;  %v940_v9 = vpop.f32.mrf.mxu0 }
 0x425   : > { %v1154_v5 = vpop.f32.mrf.mxu1  ;;  %v1080_v14 = vpop.f32.mrf.mxu0 }
 0x426   : > { %v1155_v6 = vadd.f32 %v1154_v5, %v938_v2 }
 0x427   : > { %v1156_v10 = vpop.f32.mrf.mxu1  ;;  %v1082_v16 = vpop.f32.mrf.mxu0 }
 0x428   : > { %v1301_v11 = vmul.f32 %v1155_v6, %v1932_v37  ;;  %v1157_v13 = vadd.f32 %v1156_v10, %v940_v9 }
 0x42a   : > { %1307 = vst [vmem:[%s269_s14] sm:$0xff] %v1301_v11  ;;  %v1302_v15 = vmul.f32 %v1157_v13, %v1926_v34 }
 0x42c   : > { %1308 = vst [vmem:[%s269_s14 + $0x8] sm:$0xff] %v1302_v15 }
 0x42f   : > { %v1225_v17 = vpop.f32.mrf.mxu0  ;;  %v1296_v18 = vpop.f32.mrf.mxu1 }
 0x430   : > { %v1226_v19 = vadd.f32 %v1225_v17, %v1009_v1  ;;  %v1297_v20 = vadd.f32 %v1296_v18, %v1080_v14 }
 0x431   : > { %v1227_v41 = vpop.f32.mrf.mxu0  ;;  %v1298_v8 = vpop.f32.mrf.mxu1 }
 0x432   : > { %v1303_v37 = vmul.f32 %v1226_v19, %v1935_v38  ;;  %v1305_v21 = vmul.f32 %v1297_v20, %v1959_v24  ;;  %v1228_v27 = vadd.f32 %v1227_v41, %v1011_v4  ;;  %v1299_v29 = vadd.f32 %v1298_v8, %v1082_v16 }
 0x434   : > { %1309 = vst [vmem:[%s269_s14 + $0x10] sm:$0xff] %v1303_v37  ;;  %1311 = vst [vmem:[%s269_s14 + $0x20] sm:$0xff] %v1305_v21  ;;  %v1304_v34 = vmul.f32 %v1228_v27, %v1929_v36  ;;  %v1306_v30 = vmul.f32 %v1299_v29, %v1946_v55 }
 0x436   : > { %1310 = vst [vmem:[%s269_s14 + $0x18] sm:$0xff] %v1304_v34  ;;  %1312 = vst [vmem:[%s269_s14 + $0x28] sm:$0xff] %v1306_v30 }
 0x437   : > { %1623 = shalt.err (!%p1620_p5)
}
 0x438   : > { %s1624_s10 = scalar_lea.hbm %s2076_s22, 768  ;;  %s1628_s11 = scalar_lea.hbm %s2118_s5, 1536 }
 0x439   : > { %p1625_p10 = scmp.ne.s32.totalorder %s2076_s22, %s1624_s10  ;;  %p1629_p2 = scmp.lt.s32.totalorder %s2076_s22, %s2118_s5 }
 0x43a   : > { %p1630_p6 = scmp.lt.s32.totalorder %s1628_s11, %s1624_s10 }
 0x43b   : > { %p1626_p1 = pnand %p1625_p10, %p2136_p3 }
 0x43c   : > { %p1631_p4 = por %p1630_p6, %p1629_p2 }
 0x43d   : > { %p1627_p0 = pneg %p1626_p1 }
 0x43f   : > { %p1632_p8 = pnand %p1631_p4, %p1627_p0 }
 0x441   : > { %1635 = shalt.err (!%p1632_p8)
}
 0x442   : > { %1468 = dma.vmem_to_hbm [thread:$0]  (%p2136_p3), %s1329_s24, 768, %s2076_s22, %s1314_s7  }
 0x443 PF: > { %s1340_s14 = sand.u32 1, %s1670_s18   ;;  %p2137_p11 = scmp.ne.s32.totalorder %s2124_s25, 0 }
 0x444   : > { %p2138_p12 = scmp.ge.s32.totalorder %s1682_s21, 2  ;;  %s1341_s16 = scalar_lea.sflag [#allocation4], %s1340_s14 }
 0x446   : > { %p1482_p7 = pnand %p2138_p12, %p2137_p11 }
 0x448   : > { %p1483_p9 = pneg %p1482_p7 }
 0x44a   : > { %1665 = dma.done.wait (%p1483_p9), %s1341_s16, 768  }
 0x44b   : > { %1667 = vsyncadd (%p1483_p9), %s1341_s16, 4294966528  ;;  %p20_p13 = scmp.ge.s32.totalorder %s1799_s15, 4   ;;  %s2139_s18 = smov %s1674_s19 }
 0x44c   : > { %s2140_s19 = smov %s1678_s20  ;;  %s2141_s20 = smov %s1815_s27 }
 0x44d   : > { %s2142_s21 = smov %s1799_s15  ;;  %22 = sbr.rel (!%p20_p13) target bundleno = 7 (0x7), region = 96 }
 0x452   :  { %1346 = vsyncpa [#allocation3], 1 }
 0x453   :  { %1348 = vsyncpa [#allocation3 + $0x1], 1 }
 0x454   :  { %1349 = vsyncpa [#allocation8], 1 }
 0x455   :  { %1351 = vsyncpa [#allocation8 + $0x1], 1 }
 0x456   :  { %1352 = vsyncpa [#allocation4], 1 }
 0x457   :  { %1354 = vsyncpa [#allocation4 + $0x1], 1 }
 0x458   :  { %1355 = vsyncpa [#allocation5], 1 }
 0x459   :  { %1357 = vsyncpa [#allocation5 + $0x1], 1 }

</bundles_post_ra>
